<compile_context>
chip_gen: v7x
topology: tpu7x:2x2x1
jax: 0.10.0
libtpu: 0.0.40
codegen_flags: <defaults>
</compile_context>

<pallas_src>
import functools

import jax
import jax.numpy as jnp
import numpy as np
from jax import lax
from jax.experimental import pallas as pl
from jax.experimental.pallas import tpu as pltpu


def _round_up(x, m):
    return ((x + m - 1) // m) * m


def _pick_tile(dim, base, cap):
    """Largest multiple of `base` dividing `dim` that is <= cap (else dim)."""
    if dim % base != 0:
        return dim
    best = base
    t = base
    limit = min(dim, cap)
    while t <= limit:
        if dim % t == 0:
            best = t
        t += base
    return best


def _vmem_limit(est_bytes):
    """Explicit scoped-VMEM request: padded estimate + margin, in [32, 48] MiB.

    Always explicit (v5e's scoped default is only 16 MiB); capped well inside
    v7x's 64 MiB physical VMEM.
    """
    return int(min(max(est_bytes + (4 << 20), 32 << 20), 48 << 20))


def _strip_rows(act, k, seg_len, wh_p):
    """act (1, wh_p) f32 -> boost/suppress multiplier rows (1, wh_p) f32.

    Per-strip mean -> softmax over strips -> boost = 1 + 0.5*softmax,
    suppress = where(softmax < max, 1.0, 0.5), expanded to lane layout with an
    iota/compare/select chain.  No reshapes, no constant matrices; padded
    columns (position >= k*seg_len) keep the value 1.0 and are ignored by the
    strip means.  Runs once per batch, so exact f32 math throughout.
    """
    pos = lax.broadcasted_iota(jnp.int32, (1, wh_p), 1)
    inv = 1.0 / float(seg_len)

    scores = []
    for i in range(k):
        m = (pos >= i * seg_len) & (pos < (i + 1) * seg_len)
        scores.append(jnp.sum(jnp.where(m, act, 0.0), keepdims=True) * inv)

    mx = functools.reduce(jnp.maximum, scores)
    exps = [jnp.exp(s - mx) for s in scores]
    denom = functools.reduce(lambda a, b: a + b, exps)
    sm = [e / denom for e in exps]
    sm_max = functools.reduce(jnp.maximum, sm)

    brow = jnp.ones((1, wh_p), jnp.float32)
    srow = jnp.ones((1, wh_p), jnp.float32)
    for i in range(k):
        m = (pos >= i * seg_len) & (pos < (i + 1) * seg_len)
        brow = jnp.where(m, 1.0 + 0.5 * sm[i], brow)
        srow = jnp.where(m, jnp.where(sm[i] < sm_max, 1.0, 0.5), srow)
    return brow, srow


# ---------------------------------------------------------------------------
# Fused single-pass kernel: per-batch slab resident, fm read from HBM once.
# ---------------------------------------------------------------------------
def _fsbm_fused_kernel(fm_ref, wvec_ref, bias_ref, boost_ref, supp_ref,
                       *, k, seg_len, wh_p):
    fm = fm_ref[0]                                            # (c, wh_p)
    # 1x1 conv over channels on the MXU (f32 weight, f32 accumulation).
    conv = jnp.dot(wvec_ref[...], fm, preferred_element_type=jnp.float32)
    act = jnp.maximum(conv + bias_ref[0, 0], 0.0)             # (1, wh_p) f32
    brow, srow = _strip_rows(act, k, seg_len, wh_p)
    boost_ref[0] = (fm * brow).astype(boost_ref.dtype)
    supp_ref[0] = (fm * srow).astype(supp_ref.dtype)


# ---------------------------------------------------------------------------
# Two-pass path, phase 1: channel-tiled conv accumulation + finalize.
# ---------------------------------------------------------------------------
def _fsbm_reduce_kernel(fm_ref, wvec_ref, bias_ref, bmul_ref, smul_ref,
                        acc_ref, *, k, seg_len, wh_p):
    ci = pl.program_id(1)

    @pl.when(ci == 0)
    def _():
        acc_ref[...] = jnp.zeros_like(acc_ref)

    # Partial 1x1 conv for this channel tile, accumulated in f32.
    acc_ref[...] += jnp.dot(wvec_ref[0], fm_ref[0],
                            preferred_element_type=jnp.float32)

    @pl.when(ci == pl.num_programs(1) - 1)
    def _():
        act = jnp.maximum(acc_ref[...] + bias_ref[0, 0], 0.0)
        brow, srow = _strip_rows(act, k, seg_len, wh_p)
        bmul_ref[0] = brow
        smul_ref[0] = srow


# ---------------------------------------------------------------------------
# Two-pass path, phase 2: streaming apply.
# ---------------------------------------------------------------------------
def _fsbm_apply_kernel(fm_ref, bmul_ref, smul_ref, boost_ref, supp_ref):
    fm = fm_ref[0]                                            # (c_tile, wh_tile)
    boost_ref[0] = (fm * bmul_ref[0]).astype(boost_ref.dtype)
    supp_ref[0] = (fm * smul_ref[0]).astype(supp_ref.dtype)


def fsbm_forward(fm, conv_w, conv_b, bn_gamma, bn_beta, bn_mean, bn_var, k,
                 eps=1e-5, force_two_pass=False):
    b, c, w, h = fm.shape
    assert w % k == 0, "w must be divisible by k (as in the PyTorch module)"
    strip = w // k
    wh = w * h
    seg_len = strip * h
    itemsize = np.dtype(fm.dtype).itemsize

    # Fold eval-mode BatchNorm into the 1x1 conv (exact algebraic rewrite):
    #   bn(conv(x)) = x @ (W*a) + (bias*a + beta - mean*a),  a = gamma/sqrt(var+eps)
    # Weight kept in f32 so low-precision inputs don't shift the softmax /
    # argmax scores (correctness-review item).
    a = (bn_gamma / jnp.sqrt(bn_var + eps)).astype(jnp.float32)
    wvec = (conv_w.reshape(c).astype(jnp.float32) * a).reshape(1, c)
    bias_eff = (conv_b.reshape(()).astype(jnp.float32) * a
                + bn_beta.astype(jnp.float32) - bn_mean.astype(jnp.float32) * a)
    bias_eff = bias_eff.reshape(1, 1).astype(jnp.float32)

    # Lane-dense layout: last dim = w*h, padded to a multiple of 128 so all
    # phase loads/stores are unmasked.  Pad columns never contribute to the
    # strip means (iota masks) and are sliced off at the end.
    wh_p = _round_up(wh, 128)
    fm2 = fm.reshape(b, c, wh)
    if wh_p != wh:
        fm2 = jnp.pad(fm2, ((0, 0), (0, 0), (0, wh_p - wh)))

    row_bytes = 8 * wh_p * 4                 # one sublane-padded (1,wh_p) f32 row
    c_p = _round_up(c, 8)

    # ---- Fused single-pass fast path --------------------------------------
    fused_est = (6 * c_p * wh_p * itemsize   # fm + 2 outputs, double-buffered
                 + 3 * c_p * wh_p * 4        # f32 temporaries (upcast / products)
                 + 8 * row_bytes)            # act / rows / masks
    if fused_est <= (40 << 20) and not force_two_pass:
        kern = functools.partial(_fsbm_fused_kernel,
                                 k=k, seg_len=seg_len, wh_p=wh_p)
        boost2, supp2 = pl.pallas_call(
            kern,
            out_shape=(jax.ShapeDtypeStruct((b, c, wh_p), fm.dtype),
                       jax.ShapeDtypeStruct((b, c, wh_p), fm.dtype)),
            grid=(b,),
            in_specs=[
                pl.BlockSpec((1, c, wh_p), lambda i: (i, 0, 0)),          # fm
                pl.BlockSpec((1, c), lambda i: (0, 0)),                   # weight
                pl.BlockSpec(memory_space=pltpu.MemorySpace.SMEM),        # bias
            ],
            out_specs=(pl.BlockSpec((1, c, wh_p), lambda i: (i, 0, 0)),
                       pl.BlockSpec((1, c, wh_p), lambda i: (i, 0, 0))),
            compiler_params=pltpu.CompilerParams(
                dimension_semantics=("parallel",),
                vmem_limit_bytes=_vmem_limit(fused_est)),
        )(fm2, wvec, bias_eff)
    else:
        target = 3 << 20     # fm-tile byte target (good balance v5e/v6e/v7x)

        # ---- Phase 1: per-batch multipliers, tiled over channels ----------
        if c % 8 == 0:
            c_tile1 = _pick_tile(c, 8, max(8, target // (wh_p * itemsize)))
        else:
            c_tile1 = c      # full-dim channel block (c not a multiple of 8)
        nc1 = c // c_tile1
        ct1_p = _round_up(c_tile1, 8)
        wvec3 = wvec.reshape(nc1, 1, c_tile1)
        red_est = (2 * ct1_p * wh_p * itemsize               # fm blocks
                   + (ct1_p * wh_p * 4 if itemsize < 4 else 0)
                   + 5 * row_bytes                           # acc + bmul/smul blocks
                   + 8 * row_bytes)                          # in-kernel temporaries
        reduce_kern = functools.partial(_fsbm_reduce_kernel,
                                        k=k, seg_len=seg_len, wh_p=wh_p)
        # TODO(synk): for b == 1 on v7x, phase 1 could additionally split the
        #             spatial axis across the two TensorCores.
        bmul, smul = pl.pallas_call(
            reduce_kern,
            out_shape=(jax.ShapeDtypeStruct((b, 1, wh_p), jnp.float32),
                       jax.ShapeDtypeStruct((b, 1, wh_p), jnp.float32)),
            grid=(b, nc1),
            in_specs=[
                pl.BlockSpec((1, c_tile1, wh_p), lambda bi, ci: (bi, ci, 0)),
                pl.BlockSpec((1, 1, c_tile1), lambda bi, ci: (ci, 0, 0)),
                pl.BlockSpec(memory_space=pltpu.MemorySpace.SMEM),
            ],
            out_specs=(pl.BlockSpec((1, 1, wh_p), lambda bi, ci: (bi, 0, 0)),
                       pl.BlockSpec((1, 1, wh_p), lambda bi, ci: (bi, 0, 0))),
            scratch_shapes=[pltpu.VMEM((1, wh_p), jnp.float32)],
            compiler_params=pltpu.CompilerParams(
                dimension_semantics=("parallel", "arbitrary"),
                vmem_limit_bytes=_vmem_limit(red_est)),
        )(fm2, wvec3, bias_eff)

        # ---- Phase 2: streaming apply (memory-bound) -----------------------
        wh_tile = _pick_tile(wh_p, 128, 8192)
        if c % 8 == 0:
            c_tile2 = _pick_tile(c, 8, max(8, target // (wh_tile * itemsize)))
        else:
            c_tile2 = c
        ct2_p = _round_up(c_tile2, 8)
        app_est = (6 * ct2_p * wh_tile * itemsize            # fm + 2 outs
                   + 3 * ct2_p * wh_tile * 4                 # f32 multiply temps
                   + 4 * 8 * wh_tile * 4)                    # multiplier blocks
        grid = (b, c // c_tile2, wh_p // wh_tile)
        boost2, supp2 = pl.pallas_call(
            _fsbm_apply_kernel,
            out_shape=(jax.ShapeDtypeStruct((b, c, wh_p), fm.dtype),
                       jax.ShapeDtypeStruct((b, c, wh_p), fm.dtype)),
            grid=grid,
            in_specs=[
                pl.BlockSpec((1, c_tile2, wh_tile),
                             lambda bi, ci, wi: (bi, ci, wi)),
                pl.BlockSpec((1, 1, wh_tile), lambda bi, ci, wi: (bi, 0, wi)),
                pl.BlockSpec((1, 1, wh_tile), lambda bi, ci, wi: (bi, 0, wi)),
            ],
            out_specs=(
                pl.BlockSpec((1, c_tile2, wh_tile),
                             lambda bi, ci, wi: (bi, ci, wi)),
                pl.BlockSpec((1, c_tile2, wh_tile),
                             lambda bi, ci, wi: (bi, ci, wi)),
            ),
            compiler_params=pltpu.CompilerParams(
                dimension_semantics=("parallel", "parallel", "parallel"),
                vmem_limit_bytes=_vmem_limit(app_est)),
        )(fm2, bmul, smul)

    if wh_p != wh:
        boost2 = boost2[:, :, :wh]
        supp2 = supp2[:, :, :wh]
    return boost2.reshape(b, c, w, h), supp2.reshape(b, c, w, h)


def fsbm_ref(fm, conv_w, conv_b, gamma, beta, mean, var, k, eps=1e-5):
    """Pure-JAX reference mirroring the PyTorch forward (eval-mode BN)."""
    b, c, w, h = fm.shape
    strip = w // k
    conv = jnp.einsum('bcwh,c->bwh', fm, conv_w.reshape(c)) + conv_b.reshape(())
    bn = (conv - mean) / jnp.sqrt(var + eps) * gamma + beta
    act = jnp.maximum(bn, 0.0)
    pooled = act.reshape(b, k, strip, h).mean(axis=(2, 3))          # (b, k)
    sm = jax.nn.softmax(pooled, axis=1)
    boost_w = jnp.repeat(sm, strip, axis=1)                         # (b, w)
    boost = fm + 0.5 * fm * boost_w[:, None, :, None]
    mx = sm.max(axis=1, keepdims=True)
    supp = jnp.where(sm < mx, 1.0, 0.5)
    supp_w = jnp.repeat(supp, strip, axis=1)
    suppress = fm * supp_w[:, None, :, None]
    return boost, suppress


if __name__ == "__main__":
    key = jax.random.PRNGKey(0)
    k1, k2 = jax.random.split(key, 2)

    def make_params(c, kw):
        conv_w = 0.1 * jax.random.normal(kw, (1, c, 1, 1), jnp.float32)
        conv_b = jnp.full((1,), 0.05, jnp.float32)
        bn_gamma = jnp.asarray(1.5, jnp.float32)
        bn_beta = jnp.asarray(0.1, jnp.float32)
        bn_mean = jnp.asarray(0.05, jnp.float32)
        bn_var = jnp.asarray(0.8, jnp.float32)
        return conv_w, conv_b, bn_gamma, bn_beta, bn_mean, bn_var

    # Case 1: 128-aligned spatial size (wh = 256); fused and two-pass paths.
    b, c, w, h, kk = 2, 4, 16, 16, 4
    fm = jax.random.normal(k1, (b, c, w, h), jnp.float32)
    params = make_params(c, k2)
    ref_b, ref_s = fsbm_ref(fm, *params, kk)
    for force in (False, True):
        out_b, out_s = fsbm_forward(fm, *params, kk, force_two_pass=force)
        jax.block_until_ready((out_b, out_s))
        assert np.allclose(np.asarray(out_b), np.asarray(ref_b),
                           rtol=1e-5, atol=1e-5)
        assert np.allclose(np.asarray(out_s), np.asarray(ref_s),
                           rtol=1e-5, atol=1e-5)

    # Case 2: non-aligned spatial size (wh = 144 -> padded to 256).
    b2, c2, w2, h2, kk2 = 2, 8, 12, 12, 4
    k3, k4 = jax.random.split(k2)
    fm_b = jax.random.normal(k3, (b2, c2, w2, h2), jnp.float32)
    params2 = make_params(c2, k4)
    ref_b2, ref_s2 = fsbm_ref(fm_b, *params2, kk2)
    for force in (False, True):
        out_b2, out_s2 = fsbm_forward(fm_b, *params2, kk2, force_two_pass=force)
        jax.block_until_ready((out_b2, out_s2))
        assert np.allclose(np.asarray(out_b2), np.asarray(ref_b2),
                           rtol=1e-5, atol=1e-5)
        assert np.allclose(np.asarray(out_s2), np.asarray(ref_s2),
                           rtol=1e-5, atol=1e-5)

    print("KERNEL_OK")
</pallas_src>

<mosaic_0001>
module attributes {stable_mosaic.version = 11 : i64} {
  func.func @_fsbm_fused_kernel(%arg0: i32, %arg1: memref<1x4x256xf32, #tpu.memory_space<vmem>>, %arg2: memref<1x4xf32, #tpu.memory_space<vmem>>, %arg3: memref<1x1xf32, #tpu.memory_space<smem>>, %arg4: memref<1x4x256xf32, #tpu.memory_space<vmem>>, %arg5: memref<1x4x256xf32, #tpu.memory_space<vmem>>) attributes {dimension_semantics = [#tpu.dimension_semantics<parallel>], iteration_bounds = array<i64: 2>, scalar_prefetch = 0 : i64, scratch_operands = 0 : i64, tpu.core_type = #tpu.core_type<tc>, window_params = [{transform_indices = @transform_0, window_bounds = array<i64: 1, 4, 256>}, {pipeline_mode = #tpu.pipeline_mode<synchronous>, transform_indices = @transform_1, window_bounds = array<i64: 1, 4>}, {transform_indices = @transform_2, window_bounds = array<i64: 1, 1>}, {transform_indices = @transform_3, window_bounds = array<i64: 1, 4, 256>}, {transform_indices = @transform_4, window_bounds = array<i64: 1, 4, 256>}]} {
    %c0 = arith.constant 0 : index
    %c0_0 = arith.constant 0 : index
    %c0_1 = arith.constant 0 : index
    %0 = vector.load %arg1[%c0, %c0_0, %c0_1] : memref<1x4x256xf32, #tpu.memory_space<vmem>>, vector<1x4x256xf32>
    %1 = vector.shape_cast %0 : vector<1x4x256xf32> to vector<4x256xf32>
    %c0_2 = arith.constant 0 : index
    %c0_3 = arith.constant 0 : index
    %2 = vector.load %arg2[%c0_2, %c0_3] : memref<1x4xf32, #tpu.memory_space<vmem>>, vector<1x4xf32>
    %cst = arith.constant dense<0.000000e+00> : vector<1x256xf32>
    %3 = tpu.matmul %2, %1, %cst {dimension_numbers = #tpu.dot_dimension_numbers<[1], [0], [0], [1], [0, 0, 1, 1], [], []>} : vector<1x4xf32>, vector<4x256xf32>, vector<1x256xf32> -> vector<1x256xf32>
    %c0_4 = arith.constant 0 : index
    %c0_5 = arith.constant 0 : index
    %4 = memref.load %arg3[%c0_4, %c0_5] : memref<1x1xf32, #tpu.memory_space<smem>>
    %5 = vector.broadcast %4 : f32 to vector<1x256xf32>
    %6 = arith.addf %3, %5 : vector<1x256xf32>
    %cst_6 = arith.constant 0.000000e+00 : f32
    %7 = vector.broadcast %cst_6 : f32 to vector<1x256xf32>
    %8 = arith.maximumf %6, %7 : vector<1x256xf32>
    %9 = tpu.iota {dimensions = array<i32: 1>} : vector<1x256xi32>
    %c0_i32 = arith.constant 0 : i32
    %10 = vector.broadcast %c0_i32 : i32 to vector<1x256xi32>
    %11 = arith.cmpi sge, %9, %10 : vector<1x256xi32>
    %c64_i32 = arith.constant 64 : i32
    %12 = vector.broadcast %c64_i32 : i32 to vector<1x256xi32>
    %13 = arith.cmpi slt, %9, %12 : vector<1x256xi32>
    %14 = arith.andi %11, %13 : vector<1x256xi1>
    %cst_7 = arith.constant 0.000000e+00 : f32
    %15 = vector.broadcast %cst_7 : f32 to vector<1x256xf32>
    %16 = arith.select %14, %8, %15 : vector<1x256xi1>, vector<1x256xf32>
    %17 = vector.shape_cast %16 : vector<1x256xf32> to vector<1x1x256xf32>
    %cst_8 = arith.constant dense<0.000000e+00> : vector<1xf32>
    %18 = vector.multi_reduction <add>, %17, %cst_8 [1, 2] : vector<1x1x256xf32> to vector<1xf32>
    %19 = vector.shape_cast %18 : vector<1xf32> to vector<1x1x1xf32>
    %20 = vector.extract %19[0, 0, 0] : f32 from vector<1x1x1xf32>
    %21 = vector.broadcast %20 : f32 to vector<1x1xf32>
    %cst_9 = arith.constant 1.562500e-02 : f32
    %22 = vector.broadcast %cst_9 : f32 to vector<1x1xf32>
    %23 = arith.mulf %21, %22 : vector<1x1xf32>
    %c64_i32_10 = arith.constant 64 : i32
    %24 = vector.broadcast %c64_i32_10 : i32 to vector<1x256xi32>
    %25 = arith.cmpi sge, %9, %24 : vector<1x256xi32>
    %c128_i32 = arith.constant 128 : i32
    %26 = vector.broadcast %c128_i32 : i32 to vector<1x256xi32>
    %27 = arith.cmpi slt, %9, %26 : vector<1x256xi32>
    %28 = arith.andi %25, %27 : vector<1x256xi1>
    %cst_11 = arith.constant 0.000000e+00 : f32
    %29 = vector.broadcast %cst_11 : f32 to vector<1x256xf32>
    %30 = arith.select %28, %8, %29 : vector<1x256xi1>, vector<1x256xf32>
    %31 = vector.shape_cast %30 : vector<1x256xf32> to vector<1x1x256xf32>
    %cst_12 = arith.constant dense<0.000000e+00> : vector<1xf32>
    %32 = vector.multi_reduction <add>, %31, %cst_12 [1, 2] : vector<1x1x256xf32> to vector<1xf32>
    %33 = vector.shape_cast %32 : vector<1xf32> to vector<1x1x1xf32>
    %34 = vector.extract %33[0, 0, 0] : f32 from vector<1x1x1xf32>
    %35 = vector.broadcast %34 : f32 to vector<1x1xf32>
    %cst_13 = arith.constant 1.562500e-02 : f32
    %36 = vector.broadcast %cst_13 : f32 to vector<1x1xf32>
    %37 = arith.mulf %35, %36 : vector<1x1xf32>
    %c128_i32_14 = arith.constant 128 : i32
    %38 = vector.broadcast %c128_i32_14 : i32 to vector<1x256xi32>
    %39 = arith.cmpi sge, %9, %38 : vector<1x256xi32>
    %c192_i32 = arith.constant 192 : i32
    %40 = vector.broadcast %c192_i32 : i32 to vector<1x256xi32>
    %41 = arith.cmpi slt, %9, %40 : vector<1x256xi32>
    %42 = arith.andi %39, %41 : vector<1x256xi1>
    %cst_15 = arith.constant 0.000000e+00 : f32
    %43 = vector.broadcast %cst_15 : f32 to vector<1x256xf32>
    %44 = arith.select %42, %8, %43 : vector<1x256xi1>, vector<1x256xf32>
    %45 = vector.shape_cast %44 : vector<1x256xf32> to vector<1x1x256xf32>
    %cst_16 = arith.constant dense<0.000000e+00> : vector<1xf32>
    %46 = vector.multi_reduction <add>, %45, %cst_16 [1, 2] : vector<1x1x256xf32> to vector<1xf32>
    %47 = vector.shape_cast %46 : vector<1xf32> to vector<1x1x1xf32>
    %48 = vector.extract %47[0, 0, 0] : f32 from vector<1x1x1xf32>
    %49 = vector.broadcast %48 : f32 to vector<1x1xf32>
    %cst_17 = arith.constant 1.562500e-02 : f32
    %50 = vector.broadcast %cst_17 : f32 to vector<1x1xf32>
    %51 = arith.mulf %49, %50 : vector<1x1xf32>
    %c192_i32_18 = arith.constant 192 : i32
    %52 = vector.broadcast %c192_i32_18 : i32 to vector<1x256xi32>
    %53 = arith.cmpi sge, %9, %52 : vector<1x256xi32>
    %c256_i32 = arith.constant 256 : i32
    %54 = vector.broadcast %c256_i32 : i32 to vector<1x256xi32>
    %55 = arith.cmpi slt, %9, %54 : vector<1x256xi32>
    %56 = arith.andi %53, %55 : vector<1x256xi1>
    %cst_19 = arith.constant 0.000000e+00 : f32
    %57 = vector.broadcast %cst_19 : f32 to vector<1x256xf32>
    %58 = arith.select %56, %8, %57 : vector<1x256xi1>, vector<1x256xf32>
    %59 = vector.shape_cast %58 : vector<1x256xf32> to vector<1x1x256xf32>
    %cst_20 = arith.constant dense<0.000000e+00> : vector<1xf32>
    %60 = vector.multi_reduction <add>, %59, %cst_20 [1, 2] : vector<1x1x256xf32> to vector<1xf32>
    %61 = vector.shape_cast %60 : vector<1xf32> to vector<1x1x1xf32>
    %62 = vector.extract %61[0, 0, 0] : f32 from vector<1x1x1xf32>
    %63 = vector.broadcast %62 : f32 to vector<1x1xf32>
    %cst_21 = arith.constant 1.562500e-02 : f32
    %64 = vector.broadcast %cst_21 : f32 to vector<1x1xf32>
    %65 = arith.mulf %63, %64 : vector<1x1xf32>
    %66 = arith.maximumf %23, %37 : vector<1x1xf32>
    %67 = arith.maximumf %66, %51 : vector<1x1xf32>
    %68 = arith.maximumf %67, %65 : vector<1x1xf32>
    %69 = arith.subf %23, %68 : vector<1x1xf32>
    %70 = math.exp %69 : vector<1x1xf32>
    %71 = arith.subf %37, %68 : vector<1x1xf32>
    %72 = math.exp %71 : vector<1x1xf32>
    %73 = arith.subf %51, %68 : vector<1x1xf32>
    %74 = math.exp %73 : vector<1x1xf32>
    %75 = arith.subf %65, %68 : vector<1x1xf32>
    %76 = math.exp %75 : vector<1x1xf32>
    %77 = arith.addf %70, %72 : vector<1x1xf32>
    %78 = arith.addf %77, %74 : vector<1x1xf32>
    %79 = arith.addf %78, %76 : vector<1x1xf32>
    %80 = arith.divf %70, %79 : vector<1x1xf32>
    %81 = arith.divf %72, %79 : vector<1x1xf32>
    %82 = arith.divf %74, %79 : vector<1x1xf32>
    %83 = arith.divf %76, %79 : vector<1x1xf32>
    %84 = arith.maximumf %80, %81 : vector<1x1xf32>
    %85 = arith.maximumf %84, %82 : vector<1x1xf32>
    %86 = arith.maximumf %85, %83 : vector<1x1xf32>
    %cst_22 = arith.constant 1.000000e+00 : f32
    %87 = vector.broadcast %cst_22 : f32 to vector<1x256xf32>
    %cst_23 = arith.constant 1.000000e+00 : f32
    %88 = vector.broadcast %cst_23 : f32 to vector<1x256xf32>
    %c0_i32_24 = arith.constant 0 : i32
    %89 = vector.broadcast %c0_i32_24 : i32 to vector<1x256xi32>
    %90 = arith.cmpi sge, %9, %89 : vector<1x256xi32>
    %c64_i32_25 = arith.constant 64 : i32
    %91 = vector.broadcast %c64_i32_25 : i32 to vector<1x256xi32>
    %92 = arith.cmpi slt, %9, %91 : vector<1x256xi32>
    %93 = arith.andi %90, %92 : vector<1x256xi1>
    %cst_26 = arith.constant 5.000000e-01 : f32
    %94 = vector.broadcast %cst_26 : f32 to vector<1x1xf32>
    %95 = arith.mulf %94, %80 : vector<1x1xf32>
    %cst_27 = arith.constant 1.000000e+00 : f32
    %96 = vector.broadcast %cst_27 : f32 to vector<1x1xf32>
    %97 = arith.addf %96, %95 : vector<1x1xf32>
    %98 = vector.shape_cast %97 : vector<1x1xf32> to vector<1x1xf32>
    %99 = vector.broadcast %98 : vector<1x1xf32> to vector<1x256xf32>
    %100 = arith.select %93, %99, %87 : vector<1x256xi1>, vector<1x256xf32>
    %101 = arith.cmpf olt, %80, %86 : vector<1x1xf32>
    %cst_28 = arith.constant 1.000000e+00 : f32
    %cst_29 = arith.constant 5.000000e-01 : f32
    %102 = vector.broadcast %cst_28 : f32 to vector<1x1xf32>
    %103 = vector.broadcast %cst_29 : f32 to vector<1x1xf32>
    %104 = arith.select %101, %102, %103 : vector<1x1xi1>, vector<1x1xf32>
    %105 = vector.shape_cast %104 : vector<1x1xf32> to vector<1x1xf32>
    %106 = vector.broadcast %105 : vector<1x1xf32> to vector<1x256xf32>
    %107 = arith.select %93, %106, %88 : vector<1x256xi1>, vector<1x256xf32>
    %c64_i32_30 = arith.constant 64 : i32
    %108 = vector.broadcast %c64_i32_30 : i32 to vector<1x256xi32>
    %109 = arith.cmpi sge, %9, %108 : vector<1x256xi32>
    %c128_i32_31 = arith.constant 128 : i32
    %110 = vector.broadcast %c128_i32_31 : i32 to vector<1x256xi32>
    %111 = arith.cmpi slt, %9, %110 : vector<1x256xi32>
    %112 = arith.andi %109, %111 : vector<1x256xi1>
    %cst_32 = arith.constant 5.000000e-01 : f32
    %113 = vector.broadcast %cst_32 : f32 to vector<1x1xf32>
    %114 = arith.mulf %113, %81 : vector<1x1xf32>
    %cst_33 = arith.constant 1.000000e+00 : f32
    %115 = vector.broadcast %cst_33 : f32 to vector<1x1xf32>
    %116 = arith.addf %115, %114 : vector<1x1xf32>
    %117 = vector.shape_cast %116 : vector<1x1xf32> to vector<1x1xf32>
    %118 = vector.broadcast %117 : vector<1x1xf32> to vector<1x256xf32>
    %119 = arith.select %112, %118, %100 : vector<1x256xi1>, vector<1x256xf32>
    %120 = arith.cmpf olt, %81, %86 : vector<1x1xf32>
    %cst_34 = arith.constant 1.000000e+00 : f32
    %cst_35 = arith.constant 5.000000e-01 : f32
    %121 = vector.broadcast %cst_34 : f32 to vector<1x1xf32>
    %122 = vector.broadcast %cst_35 : f32 to vector<1x1xf32>
    %123 = arith.select %120, %121, %122 : vector<1x1xi1>, vector<1x1xf32>
    %124 = vector.shape_cast %123 : vector<1x1xf32> to vector<1x1xf32>
    %125 = vector.broadcast %124 : vector<1x1xf32> to vector<1x256xf32>
    %126 = arith.select %112, %125, %107 : vector<1x256xi1>, vector<1x256xf32>
    %c128_i32_36 = arith.constant 128 : i32
    %127 = vector.broadcast %c128_i32_36 : i32 to vector<1x256xi32>
    %128 = arith.cmpi sge, %9, %127 : vector<1x256xi32>
    %c192_i32_37 = arith.constant 192 : i32
    %129 = vector.broadcast %c192_i32_37 : i32 to vector<1x256xi32>
    %130 = arith.cmpi slt, %9, %129 : vector<1x256xi32>
    %131 = arith.andi %128, %130 : vector<1x256xi1>
    %cst_38 = arith.constant 5.000000e-01 : f32
    %132 = vector.broadcast %cst_38 : f32 to vector<1x1xf32>
    %133 = arith.mulf %132, %82 : vector<1x1xf32>
    %cst_39 = arith.constant 1.000000e+00 : f32
    %134 = vector.broadcast %cst_39 : f32 to vector<1x1xf32>
    %135 = arith.addf %134, %133 : vector<1x1xf32>
    %136 = vector.shape_cast %135 : vector<1x1xf32> to vector<1x1xf32>
    %137 = vector.broadcast %136 : vector<1x1xf32> to vector<1x256xf32>
    %138 = arith.select %131, %137, %119 : vector<1x256xi1>, vector<1x256xf32>
    %139 = arith.cmpf olt, %82, %86 : vector<1x1xf32>
    %cst_40 = arith.constant 1.000000e+00 : f32
    %cst_41 = arith.constant 5.000000e-01 : f32
    %140 = vector.broadcast %cst_40 : f32 to vector<1x1xf32>
    %141 = vector.broadcast %cst_41 : f32 to vector<1x1xf32>
    %142 = arith.select %139, %140, %141 : vector<1x1xi1>, vector<1x1xf32>
    %143 = vector.shape_cast %142 : vector<1x1xf32> to vector<1x1xf32>
    %144 = vector.broadcast %143 : vector<1x1xf32> to vector<1x256xf32>
    %145 = arith.select %131, %144, %126 : vector<1x256xi1>, vector<1x256xf32>
    %c192_i32_42 = arith.constant 192 : i32
    %146 = vector.broadcast %c192_i32_42 : i32 to vector<1x256xi32>
    %147 = arith.cmpi sge, %9, %146 : vector<1x256xi32>
    %c256_i32_43 = arith.constant 256 : i32
    %148 = vector.broadcast %c256_i32_43 : i32 to vector<1x256xi32>
    %149 = arith.cmpi slt, %9, %148 : vector<1x256xi32>
    %150 = arith.andi %147, %149 : vector<1x256xi1>
    %cst_44 = arith.constant 5.000000e-01 : f32
    %151 = vector.broadcast %cst_44 : f32 to vector<1x1xf32>
    %152 = arith.mulf %151, %83 : vector<1x1xf32>
    %cst_45 = arith.constant 1.000000e+00 : f32
    %153 = vector.broadcast %cst_45 : f32 to vector<1x1xf32>
    %154 = arith.addf %153, %152 : vector<1x1xf32>
    %155 = vector.shape_cast %154 : vector<1x1xf32> to vector<1x1xf32>
    %156 = vector.broadcast %155 : vector<1x1xf32> to vector<1x256xf32>
    %157 = arith.select %150, %156, %138 : vector<1x256xi1>, vector<1x256xf32>
    %158 = arith.cmpf olt, %83, %86 : vector<1x1xf32>
    %cst_46 = arith.constant 1.000000e+00 : f32
    %cst_47 = arith.constant 5.000000e-01 : f32
    %159 = vector.broadcast %cst_46 : f32 to vector<1x1xf32>
    %160 = vector.broadcast %cst_47 : f32 to vector<1x1xf32>
    %161 = arith.select %158, %159, %160 : vector<1x1xi1>, vector<1x1xf32>
    %162 = vector.shape_cast %161 : vector<1x1xf32> to vector<1x1xf32>
    %163 = vector.broadcast %162 : vector<1x1xf32> to vector<1x256xf32>
    %164 = arith.select %150, %163, %145 : vector<1x256xi1>, vector<1x256xf32>
    %165 = vector.broadcast %157 : vector<1x256xf32> to vector<4x256xf32>
    %166 = arith.mulf %1, %165 : vector<4x256xf32>
    %c0_48 = arith.constant 0 : index
    %c0_49 = arith.constant 0 : index
    %c0_50 = arith.constant 0 : index
    %167 = vector.load %arg4[%c0_48, %c0_49, %c0_50] : memref<1x4x256xf32, #tpu.memory_space<vmem>>, vector<1x4x256xf32>
    %168 = vector.shape_cast %167 : vector<1x4x256xf32> to vector<4x256xf32>
    %169 = vector.shape_cast %166 : vector<4x256xf32> to vector<1x4x256xf32>
    tpu.vector_store %arg4[%c0_48, %c0_49, %c0_50], %169 {strides = array<i32>} : memref<1x4x256xf32, #tpu.memory_space<vmem>>, vector<1x4x256xf32>,
    %170 = vector.broadcast %164 : vector<1x256xf32> to vector<4x256xf32>
    %171 = arith.mulf %1, %170 : vector<4x256xf32>
    %c0_51 = arith.constant 0 : index
    %c0_52 = arith.constant 0 : index
    %c0_53 = arith.constant 0 : index
    %172 = vector.load %arg5[%c0_51, %c0_52, %c0_53] : memref<1x4x256xf32, #tpu.memory_space<vmem>>, vector<1x4x256xf32>
    %173 = vector.shape_cast %172 : vector<1x4x256xf32> to vector<4x256xf32>
    %174 = vector.shape_cast %171 : vector<4x256xf32> to vector<1x4x256xf32>
    tpu.vector_store %arg5[%c0_51, %c0_52, %c0_53], %174 {strides = array<i32>} : memref<1x4x256xf32, #tpu.memory_space<vmem>>, vector<1x4x256xf32>,
    return
  }
  func.func @transform_0(%arg0: i32) -> (i32, i32, i32) {
    %c0_i32 = arith.constant 0 : i32
    %c0_i32_0 = arith.constant 0 : i32
    %c0_i32_1 = arith.constant 0 : i32
    return %arg0, %c0_i32, %c0_i32_0 : i32, i32, i32
  }
  func.func @transform_1(%arg0: i32) -> (i32, i32) {
    %c0_i32 = arith.constant 0 : i32
    %c0_i32_0 = arith.constant 0 : i32
    %c0_i32_1 = arith.constant 0 : i32
    return %c0_i32, %c0_i32_0 : i32, i32
  }
  func.func @transform_2(%arg0: i32) -> (i32, i32) {
    %c0_i32 = arith.constant 0 : i32
    %c0_i32_0 = arith.constant 0 : i32
    %c0_i32_1 = arith.constant 0 : i32
    return %c0_i32, %c0_i32_0 : i32, i32
  }
  func.func @transform_3(%arg0: i32) -> (i32, i32, i32) {
    %c0_i32 = arith.constant 0 : i32
    %c0_i32_0 = arith.constant 0 : i32
    %c0_i32_1 = arith.constant 0 : i32
    return %arg0, %c0_i32, %c0_i32_0 : i32, i32, i32
  }
  func.func @transform_4(%arg0: i32) -> (i32, i32, i32) {
    %c0_i32 = arith.constant 0 : i32
    %c0_i32_0 = arith.constant 0 : i32
    %c0_i32_1 = arith.constant 0 : i32
    return %arg0, %c0_i32, %c0_i32_0 : i32, i32, i32
  }
}

</mosaic_0001>

<bundles_post_ra>
// kernel: tpu_custom_call.1
= control target key start
LH: loop header
LB: loop body
LE: loop exit
PB: predicated region body
PF: predicated region fallthrough
CT: control target
= control target key end

     0   :  { %s1120_s0 = inlined_call_operand.hbm [shape: f32[2,4,256], index: 0, kind: input, shape index: {}]   ;;  %s1121_s1 = inlined_call_operand.vmem [shape: f32[1,4], index: 1, kind: input, shape index: {}]   ;;  %s1122_s2 = inlined_call_operand.<no memory space> [shape: f32[1,1], index: 2, kind: input, shape index: {}]   ;;  %s1123_s3 = inlined_call_operand.hbm [shape: f32[2,4,256], index: 3, kind: output, shape index: {0}]   ;;  %s1124_s4 = inlined_call_operand.hbm [shape: f32[2,4,256], index: 4, kind: output, shape index: {1}]  }
   0x1   :  { %10 = sst [smem:[#allocation2]] %s1122_s2 }
   0x2   :  { %11 = vsyncpa [#allocation4], 0 }
   0x3   :  { %13 = vsyncpa [#allocation4 + $0x1], 0 }
   0x4   :  { %14 = vsyncpa [#allocation5], 0 }
   0x5   :  { %16 = vsyncpa [#allocation5 + $0x1], 0 }
   0x6   :  { %17 = vsyncpa [#allocation8], 0 }
   0x7   :  { %19 = vsyncpa [#allocation8 + $0x1], 0  ;;  %s871_s17 = smov 0   ;;  %s873_s18 = smov 0  }
   0x8   :  { %s875_s19 = smov 0   ;;  %s877_s20 = smov 0  }
   0x9 LB: > { %s892_s2 = sadd.s32 4294967295, %s836_s20   ;;  %s612_s21 = sadd.s32 4294967294, %s836_s20   ;;  %s836_s20 = sphi %s877_s20, %s1139_s20   ;;  %s832_s19 = sphi %s875_s19, %s1138_s19   ;;  %s828_s18 = sphi %s873_s18, %s1137_s18   ;;  %s824_s17 = sphi %s871_s17, %s1136_s17  }
   0xa   : > { %s896_s22 = sadd.s32 1, %s836_s20   ;;  %s32_s23 = sadd.s32 1, %s832_s19 }
   0xb   : > { %s29_s24 = ssub.s32 %s836_s20, %s896_s22  ;;  %p39_p0 = scmp.ne.s32.totalorder %s832_s19, %s828_s18 }
   0xc   : > { %p30_p1 = scmp.eq.s32.totalorder %s29_s24, 0  ;;  %p40_p2 = scmp.eq.s32.totalorder %s836_s20, 0 }
   0xd   : > { %p45_p3 = scmp.ne.s32.totalorder %s828_s18, %s824_s17  ;;  %p46_p4 = scmp.eq.s32.totalorder %s892_s2, 0 }
   0xe   : > { %s908_s25 = scalar_select %p30_p1, %s832_s19, %s32_s23  }
   0xf   : > { %p910_p5 = por %p40_p2, %p39_p0  ;;  %p914_p6 = por %p46_p4, %p45_p3 }
  0x10   : > { %p111_p7 = scmp.eq.s32.totalorder %s892_s2, 1  ;;  %p117_p8 = scmp.eq.s32.totalorder %s612_s21, 1 }
  0x11   : > { %p661_p10 = scmp.lt.s32.totalorder %s836_s20, 2  ;;  %s169_s30 = sand.u32 1, %s832_s19  }
  0x12   : > { %p921_p11 = por %p111_p7, %p39_p0  ;;  %p925_p12 = por %p117_p8, %p45_p3 }
  0x13   : > { %s633_s5 = sshll.u32 %s836_s20, 7  ;;  %s615_s6 = sshll.u32 %s169_s30, 3 }
  0x14   : > { %s1128_s28 = scalar_select %p921_p11, 1, 0 }
  0x15   : > { %s1129_s29 = scalar_select %p925_p12, 1, 0 }
  0x16   : > { %s934_s9 = scalar_lea.hbm %s1120_s0, %s633_s5  ;;  %s173_s10 = scalar_lea.vmem [#allocation3], %s615_s6 }
  0x17   : > { %s181_s11 = sshll.u32 %s173_s10, 4  ;;  %p938_p13 = pnand %p661_p10, %p910_p5  ;;  %s942_s11 = int_to_ptr.vmem [resolvable:$true] %s181_s11 }
  0x18   : > { %s170_s13 = scalar_lea.sflag [#allocation4], %s169_s30  ;;  %s708_s14 = scalar_lea.hbm %s934_s9, 128 }
  0x19   : > { %p709_p2 = scmp.ne.s32.totalorder %s934_s9, %s708_s14  ;;  %p710_p3 = pneg %p938_p13 }
  0x1a   : > { %s713_s21 = scalar_lea.hbm %s1120_s0, 256  ;;  %p714_p5 = scmp.lt.u32.totalorder %s934_s9, %s1120_s0 }
  0x1b   : > { %p711_p4 = pnand %p710_p3, %p709_p2  ;;  %p715_p8 = scmp.lt.u32.totalorder %s713_s21, %s708_s14 }
  0x1c   : > { %p717_p9 = scmp.lt.u32.totalorder %s708_s14, %s934_s9 }
  0x1d   : > { %p712_p7 = pneg %p711_p4  ;;  %p716_p10 = por %p715_p8, %p714_p5 }
  0x1f   : > { %p718_p0 = por %p717_p9, %p716_p10 }
  0x21   : > { %p719_p1 = pnand %p718_p0, %p712_p7 }
  0x23   : > { %722 = shalt.err (!%p719_p1)
}
  0x24   : > { %s723_s26 = scalar_lea.vmem %s942_s11, 128  ;;  %s838_s30 = smov [#allocation3]  }
  0x25   : > { %p724_p2 = scmp.ne.s32.totalorder %s942_s11, %s723_s26  ;;  %s728_s5 = sshll.u32 %s838_s30, 4  ;;  %s729_s5 = int_to_ptr.vmem [resolvable:$false] %s728_s5 }
  0x26   : > { %s730_s6 = scalar_lea.vmem %s729_s5, 256  ;;  %p731_p11 = scmp.lt.s32.totalorder %s942_s11, %s729_s5 }
  0x27   : > { %p726_p4 = pnand %p724_p2, %p710_p3  ;;  %p732_p5 = scmp.lt.s32.totalorder %s730_s6, %s723_s26 }
  0x29   : > { %p727_p12 = pneg %p726_p4  ;;  %p733_p8 = por %p732_p5, %p731_p11 }
  0x2b   : > { %p734_p9 = pnand %p733_p8, %p727_p12 }
  0x2d   : > { %737 = shalt.err (!%p734_p9)
}
  0x2e   : > { %653 = dma.hbm_to_vmem [thread:$0]  (!%p938_p13), %s934_s9, 128, %s942_s11, %s170_s13  }
  0x2f   : > { %p1131_p0 = scmp.lt.s32.totalorder %s836_s20, 3  ;;  %p1132_p1 = scmp.ge.s32.totalorder %s836_s20, 1 }
  0x31   : > { %p187_p3 = pnand %p1132_p1, %p1131_p0 }
  0x32   : > { %s976_s7 = sand.u32 (!%p187_p3), 1, %s828_s18  }
  0x33   : > { %190 = sbr.rel (%p187_p3) target bundleno = 581 (0x245), region = 32  ;;  %s979_s8 = sshll.u32 (!%p187_p3), %s976_s7, 3 }
  0x34   : > { %s193_s10 = scalar_lea.sflag (!%p187_p3), [#allocation4], %s976_s7  ;;  %s196_s12 = scalar_lea.vmem (!%p187_p3), [#allocation3], %s979_s8 }
  0x3a   : > { %811 = dma.done.wait (%p914_p6), %s193_s10, 128  }
  0x3b   : > { %813 = vsyncadd (%p914_p6), %s193_s10, 4294967168  ;;  %v839_v0 = vmov 0.0   ;;  %v987_v1 = vld [vmem:[%s196_s12] sm:$0xff]  ;;  %vm236_vm0 = vcmask 1043456   ;;  %vm232_vm1 = vcmask 31744   ;;  %s228_s13 = sld [smem:[#allocation2]]  ;;  %v314_v4 = vlaneseq }
  0x3c   : > { %305 = vmatprep.mubr.f32.mxu0 %v839_v0  ;;  %v231_v2 = vcombine.high %v987_v1, %v987_v1  ;;  %v227_v3 = vld [vmem:[%s1121_s1] sm:$0x1]  ;;  %vm325_vm3 = vcmask 1040384   ;;  %s634_s21 = sshll.u32 %s892_s2, 7  ;;  %s218_s23 = scalar_lea.vmem [#allocation6], %s979_s8 }
  0x3d   : > { %v995_v5 = vand.u32 127, %v314_v4  ;;  %s496_s24 = sshll.u32 %s218_s23, 4  ;;  %s1028_s5 = scalar_lea.hbm %s1123_s3, %s634_s21  ;;  %s1030_s24 = int_to_ptr.vmem [resolvable:$true] %s496_s24 }
  0x3e   : > { %622 = vmatprep.subr.msk.mxu0 %vm236_vm0, %v231_v2  ;;  %s225_s6 = scalar_lea.vmem [#allocation7], %s979_s8  ;;  %s477_s12 = scalar_lea.sflag [#allocation5], %s976_s7 }
  0x3f   : > { %623 = vmatpush1.msk.msra.mxu0 %vm236_vm0, %v987_v1  ;;  %v998_v7 = vadd.s32 128, %v995_v5  ;;  %vm319_vm2 = vcmp.lt.s32.totalorder %v995_v5, 64  ;;  %vm340_vm5 = vcmp.ge.s32.totalorder %v995_v5, 64  ;;  %s1043_s10 = sshll.u32 %s225_s6, 4  ;;  %s738_s9 = scalar_lea.vmem %s1030_s24, 128  ;;  %s1076_s10 = int_to_ptr.vmem [resolvable:$true] %s1043_s10 }
  0x40   : > { %624 = vmatmul.mubr.msk.f32.vlgmr.msra.gmra.mrb[0].mxu0 %vm232_vm1, %v227_v3  ;;  %p739_p6 = scmp.ne.s32.totalorder %s1030_s24, %s738_s9  ;;  %p1133_p11 = scmp.ne.s32.totalorder %s1128_s28, 0 }
  0x41   : > { %v229_v6 = vstv %s228_s13  ;;  %vm365_vm4 = vcmp.lt.s32.totalorder %v998_v7, 192  ;;  %vm385_vm6 = vcmp.ge.s32.totalorder %v998_v7, 192  ;;  %s841_s11 = smov [#allocation6]  }
  0x42   : > { %p740_p12 = pnand %p739_p6, %p1133_p11  ;;  %s742_s13 = sshll.u32 %s841_s11, 4  ;;  %s743_s13 = int_to_ptr.vmem [resolvable:$false] %s742_s13 }
  0x43   : > { %p745_p7 = scmp.lt.s32.totalorder %s1030_s24, %s743_s13 }
  0x44   : > { %p741_p13 = pneg %p740_p12 }
 0x113   : > { %v307_v8 = vpop.f32.mrb[0].mxu0 }
 0x114   : > { %v308_v9 = vadd.f32 %v307_v8, %v229_v6  ;;  %v309_v10 = vpop.f32.mrb[1].mxu0 }
 0x115   : > { %v310_v11 = vadd.f32 %v309_v10, %v229_v6 }
 0x116   : > { %v312_v12 = vmax.f32 %v308_v9, 0.0 }
 0x117   : > { %v313_v13 = vmax.f32 %v310_v11, 0.0 }
 0x118   : > { %v323_v14 = vsel %vm319_vm2, %v312_v12, 0.0  ;;  %v346_v18 = vsel %vm340_vm5, %v312_v12, 0.0 }
 0x119   : > { %v326_v15 = vsel %vm325_vm3, %v323_v14, 0.0  ;;  %v369_v16 = vsel %vm365_vm4, %v313_v13, 0.0  ;;  %v391_v19 = vsel %vm385_vm6, %v313_v13, 0.0  ;;  %v348_v20 = vsel %vm325_vm3, %v346_v18, 0.0 }
 0x11a   : > { %329 = vadd.xlane.f32.xlu0 %v326_v15  ;;  %v371_v17 = vsel %vm325_vm3, %v369_v16, 0.0  ;;  %v393_v21 = vsel %vm325_vm3, %v391_v19, 0.0 }
 0x11b   : > { %373 = vadd.xlane.f32.xlu1 %v371_v17 }
 0x11e   : > { %351 = vadd.xlane.f32.xlu0 %v348_v20 }
 0x11f   : > { %395 = vadd.xlane.f32.xlu1 %v393_v21 }
 0x1a7   : > { %v330_v22 = vpop.xlane.xlu0 %329 }
 0x1a8   : > { %v331_v23 = vrot.slane %v330_v22, 4  ;;  %v374_v24 = vpop.xlane.xlu1 %373 }
 0x1a9   : > { %v375_v25 = vrot.slane %v374_v24, 4 }
 0x1aa   : > { %v332_v26 = vadd.f32 %v331_v23, %v330_v22 }
 0x1ab   : > { %v376_v27 = vadd.f32 %v375_v25, %v374_v24  ;;  %v352_v28 = vpop.xlane.xlu0 %351 }
 0x1ac   : > { %v333_v29 = vrot.slane %v332_v26, 2  ;;  %v353_v30 = vrot.slane %v352_v28, 4  ;;  %v396_v31 = vpop.xlane.xlu1 %395 }
 0x1ad   : > { %v377_v32 = vrot.slane %v376_v27, 2  ;;  %v397_v33 = vrot.slane %v396_v31, 4 }
 0x1ae   : > { %v354_v34 = vadd.f32 %v353_v30, %v352_v28  ;;  %v334_v35 = vadd.f32 %v333_v29, %v332_v26 }
 0x1af   : > { %v398_v36 = vadd.f32 %v397_v33, %v396_v31  ;;  %v378_v37 = vadd.f32 %v377_v32, %v376_v27 }
 0x1b0   : > { %v355_v38 = vrot.slane %v354_v34, 2  ;;  %v335_v39 = vrot.slane %v334_v35, 1 }
 0x1b1   : > { %v399_v40 = vrot.slane %v398_v36, 2  ;;  %v379_v44 = vrot.slane %v378_v37, 1 }
 0x1b2   : > { %v356_v41 = vadd.f32 %v355_v38, %v354_v34  ;;  %v336_v42 = vadd.f32 %v335_v39, %v334_v35 }
 0x1b3   : > { %v400_v43 = vadd.f32 %v399_v40, %v398_v36  ;;  %v380_v48 = vadd.f32 %v379_v44, %v378_v37  ;;  %v840_v36 = vmov 0.5  }
 0x1b4   : > { %636 = vpush %v336_v42  ;;  %v357_v45 = vrot.slane %v356_v41, 1 }
 0x1b5   : > { %v401_v46 = vrot.slane %v400_v43, 1 }
 0x1b6   : > { %v358_v47 = vadd.f32 %v357_v45, %v356_v41 }
 0x1b7   : > { %v402_v49 = vadd.f32 %v401_v46, %v400_v43 }
 0x1b8   : > { %638 = vpush %v358_v47 }
 0x1b9   : > { %640 = vpush %v380_v48 }
 0x1ba   : > { %642 = vpush %v402_v49 }
 0x1e5   : > { %s637_s27 = spop %636 }
 0x1e6   : > { %v338_v50 = vstv %s637_s27  ;;  %s744_s27 = scalar_lea.vmem %s743_s13, 256 }
 0x1e7   : > { %v339_v52 = vmul.f32 0.015625, %v338_v50  ;;  %p746_p10 = scmp.lt.s32.totalorder %s744_s27, %s738_s9 }
 0x1e9   : > { %s639_s14 = spop %638  ;;  %p747_p2 = por %p746_p10, %p745_p7 }
 0x1ea   : > { %v360_v51 = vstv %s639_s14  ;;  %s641_s15 = spop %640 }
 0x1eb   : > { %v361_v53 = vmul.f32 0.015625, %v360_v51  ;;  %v382_v54 = vstv %s641_s15  ;;  %s643_s16 = spop %642  ;;  %p748_p4 = pnand %p747_p2, %p741_p13 }
 0x1ec   : > { %v404_v55 = vstv %s643_s16  ;;  %v383_v57 = vmul.f32 0.015625, %v382_v54 }
 0x1ed   : > { %v406_v56 = vmax.f32 %v339_v52, %v361_v53  ;;  %v405_v59 = vmul.f32 0.015625, %v404_v55 }
 0x1ef   : > { %v407_v58 = vmax.f32 %v406_v56, %v383_v57 }
 0x1f1   : > { %v408_v60 = vmax.f32 %v407_v58, %v405_v59 }
 0x1f3   : > { %v409_v61 = vsub.f32 %v339_v52, %v408_v60  ;;  %v412_v62 = vsub.f32 %v361_v53, %v408_v60  ;;  %v415_v63 = vsub.f32 %v383_v57, %v408_v60  ;;  %v418_v0 = vsub.f32 %v405_v59, %v408_v60 }
 0x1f5   : > { %v410_v2 = vmul.f32 1.442695, %v409_v61  ;;  %v413_v3 = vmul.f32 1.442695, %v412_v62  ;;  %v416_v4 = vmul.f32 1.442695, %v415_v63 }
 0x1f6   : > { %v419_v6 = vmul.f32 1.442695, %v418_v0 }
 0x1f7   : > { %698 = vpow2.f32 %v410_v2 }
 0x1f8   : > { %700 = vpow2.f32 %v413_v3 }
 0x1f9   : > { %702 = vpow2.f32 %v416_v4 }
 0x1fa   : > { %704 = vpow2.f32 %v419_v6 }
 0x201   : > { %v699_v8 = vpop.eup %698 }
 0x202   : > { %v701_v9 = vpop.eup %700 }
 0x203   : > { %v421_v10 = vadd.f32 %v701_v9, %v699_v8  ;;  %v703_v11 = vpop.eup %702 }
 0x204   : > { %v705_v13 = vpop.eup %704 }
 0x205   : > { %v422_v12 = vadd.f32 %v703_v11, %v421_v10 }
 0x207   : > { %v423_v14 = vadd.f32 %v705_v13, %v422_v12 }
 0x209   : > { %706 = vrcp.f32 %v423_v14 }
 0x213   : > { %v707_v15 = vpop.eup %706 }
 0x214   : > { %v425_v16 = vmul.f32 %v707_v15, %v699_v8  ;;  %v426_v17 = vmul.f32 %v707_v15, %v701_v9  ;;  %v427_v18 = vmul.f32 %v707_v15, %v703_v11  ;;  %v428_v19 = vmul.f32 %v707_v15, %v705_v13 }
 0x216   : > { %v429_v20 = vmax.f32 %v425_v16, %v426_v17  ;;  %v432_v21 = vmul.f32 0.5, %v425_v16  ;;  %v440_v22 = vmul.f32 0.5, %v426_v17  ;;  %v448_v23 = vmul.f32 0.5, %v427_v18 }
 0x217   : > { %v456_v24 = vmul.f32 0.5, %v428_v19 }
 0x218   : > { %v430_v25 = vmax.f32 %v429_v20, %v427_v18  ;;  %v433_v26 = vadd.f32 1.0, %v432_v21  ;;  %v441_v27 = vadd.f32 1.0, %v440_v22  ;;  %v449_v28 = vadd.f32 1.0, %v448_v23 }
 0x219   : > { %v457_v29 = vadd.f32 1.0, %v456_v24 }
 0x21a   : > { %v431_v30 = vmax.f32 %v430_v25, %v428_v19  ;;  %v434_v31 = vsel %vm319_vm2, %v433_v26, 1.0  ;;  %v451_v32 = vsel %vm365_vm4, %v449_v28, 1.0 }
 0x21b   : > { %v442_v33 = vsel %vm340_vm5, %v441_v27, %v434_v31  ;;  %v459_v34 = vsel %vm385_vm6, %v457_v29, %v451_v32 }
 0x21c   : > { %v466_v35 = vcombine.low %v442_v33, %v459_v34  ;;  %vm436_vm7 = vcmp.lt.f32.partialorder %v425_v16, %v431_v30  ;;  %vm444_vm8 = vcmp.lt.f32.partialorder %v426_v17, %v431_v30  ;;  %vm452_vm9 = vcmp.lt.f32.partialorder %v427_v18, %v431_v30 }
 0x21d   : > { %v437_v37 = vsel %vm436_vm7, 1.0, %v840_v36  ;;  %v445_v38 = vsel %vm444_vm8, 1.0, %v840_v36  ;;  %v453_v39 = vsel %vm452_vm9, 1.0, %v840_v36  ;;  %vm460_vm10 = vcmp.lt.f32.partialorder %v428_v19, %v431_v30 }
 0x21e   : > { %v468_v40 = vmul.f32 %v466_v35, %v987_v1  ;;  %v438_v41 = vsel %vm319_vm2, %v437_v37, 1.0  ;;  %v455_v42 = vsel %vm365_vm4, %v453_v39, 1.0  ;;  %v461_v43 = vsel %vm460_vm10, 1.0, %v840_v36 }
 0x21f   : > { %v446_v44 = vsel %vm340_vm5, %v445_v38, %v438_v41  ;;  %v463_v45 = vsel %vm385_vm6, %v461_v43, %v455_v42 }
 0x220   : > { %469 = vst [vmem:[%s218_s23] sm:$0xff] %v468_v40  ;;  %v472_v46 = vcombine.low %v446_v44, %v463_v45 }
 0x221   : > { %751 = shalt.err (!%p748_p4)
}
 0x222   : > { %s752_s14 = scalar_lea.hbm %s1028_s5, 128  ;;  %s756_s23 = scalar_lea.hbm %s1123_s3, 256 }
 0x223   : > { %p753_p5 = scmp.ne.s32.totalorder %s1028_s5, %s752_s14  ;;  %p757_p0 = scmp.lt.u32.totalorder %s1028_s5, %s1123_s3 }
 0x224   : > { %p758_p1 = scmp.lt.u32.totalorder %s756_s23, %s752_s14  ;;  %p760_p6 = scmp.lt.u32.totalorder %s752_s14, %s1028_s5 }
 0x225   : > { %p754_p8 = pnand %p753_p5, %p1133_p11 }
 0x226   : > { %p759_p3 = por %p758_p1, %p757_p0 }
 0x227   : > { %p755_p9 = pneg %p754_p8 }
 0x228   : > { %p761_p12 = por %p760_p6, %p759_p3 }
 0x22a   : > { %p762_p13 = pnand %p761_p12, %p755_p9 }
 0x22c   : > { %765 = shalt.err (!%p762_p13)
}
 0x22d   : > { %646 = dma.vmem_to_hbm [thread:$0]  (%p1133_p11), %s1030_s24, 128, %s1028_s5, %s477_s12   ;;  %v474_v5 = vmul.f32 %v472_v46, %v987_v1 }
 0x22e   : > { %s1073_s13 = scalar_lea.hbm %s1124_s4, %s634_s21  ;;  %s482_s27 = scalar_lea.sflag [#allocation8], %s976_s7 }
 0x22f   : > { %475 = vst [vmem:[%s225_s6] sm:$0xff] %v474_v5  ;;  %s766_s14 = scalar_lea.vmem %s1076_s10, 128  ;;  %s842_s24 = smov [#allocation7]  }
 0x230   : > { %p767_p7 = scmp.ne.s32.totalorder %s1076_s10, %s766_s14  ;;  %s770_s2 = sshll.u32 %s842_s24, 4  ;;  %s771_s2 = int_to_ptr.vmem [resolvable:$false] %s770_s2 }
 0x231   : > { %s772_s5 = scalar_lea.vmem %s771_s2, 256  ;;  %p773_p4 = scmp.lt.s32.totalorder %s1076_s10, %s771_s2 }
 0x232   : > { %p768_p10 = pnand %p767_p7, %p1133_p11  ;;  %p774_p5 = scmp.lt.s32.totalorder %s772_s5, %s766_s14 }
 0x234   : > { %p769_p2 = pneg %p768_p10  ;;  %p775_p8 = por %p774_p5, %p773_p4 }
 0x236   : > { %p776_p9 = pnand %p775_p8, %p769_p2 }
 0x238   : > { %779 = shalt.err (!%p776_p9)
}
 0x239   : > { %s780_s7 = scalar_lea.hbm %s1073_s13, 128  ;;  %s784_s6 = scalar_lea.hbm %s1124_s4, 256 }
 0x23a   : > { %p781_p0 = scmp.ne.s32.totalorder %s1073_s13, %s780_s7  ;;  %p785_p6 = scmp.lt.u32.totalorder %s1073_s13, %s1124_s4 }
 0x23b   : > { %p786_p12 = scmp.lt.u32.totalorder %s784_s6, %s780_s7  ;;  %p788_p7 = scmp.lt.u32.totalorder %s780_s7, %s1073_s13 }
 0x23c   : > { %p782_p1 = pnand %p781_p0, %p1133_p11 }
 0x23d   : > { %p787_p13 = por %p786_p12, %p785_p6 }
 0x23e   : > { %p783_p3 = pneg %p782_p1 }
 0x23f   : > { %p789_p10 = por %p788_p7, %p787_p13 }
 0x241   : > { %p790_p2 = pnand %p789_p10, %p783_p3 }
 0x243   : > { %793 = shalt.err (!%p790_p2)
}
 0x244   : > { %647 = dma.vmem_to_hbm [thread:$0]  (%p1133_p11), %s1076_s10, 128, %s1073_s13, %s482_s27  }
 0x245 PF: > { %s522_s16 = sand.u32 1, %s824_s17   ;;  %p1134_p4 = scmp.ne.s32.totalorder %s1129_s29, 0 }
 0x246   : > { %p1135_p5 = scmp.ge.s32.totalorder %s836_s20, 2  ;;  %s523_s23 = scalar_lea.sflag [#allocation5], %s522_s16 }
 0x248   : > { %p655_p8 = pnand %p1135_p5, %p1134_p4 }
 0x24a   : > { %815 = dma.done.wait (!%p655_p8), %s523_s23, 128  }
 0x24b   : > { %817 = vsyncadd (!%p655_p8), %s523_s23, 4294967168  ;;  %s532_s26 = scalar_lea.sflag [#allocation8], %s522_s16 }
 0x24c   : > { %819 = dma.done.wait (!%p655_p8), %s532_s26, 128  }
 0x24d   : > { %821 = vsyncadd (!%p655_p8), %s532_s26, 4294967168  ;;  %p22_p11 = scmp.ge.s32.totalorder %s896_s22, 4   ;;  %s1136_s17 = smov %s828_s18 }
 0x24e   : > { %s1137_s18 = smov %s832_s19  ;;  %s1138_s19 = smov %s908_s25 }
 0x24f   : > { %s1139_s20 = smov %s896_s22  ;;  %24 = sbr.rel (!%p22_p11) target bundleno = 9 (0x9), region = 94 }
 0x256   :  { %537 = vsyncpa [#allocation4], 1 }
 0x257   :  { %539 = vsyncpa [#allocation4 + $0x1], 1 }
 0x258   :  { %540 = vsyncpa [#allocation5], 1 }
 0x259   :  { %542 = vsyncpa [#allocation5 + $0x1], 1 }
 0x25a   :  { %543 = vsyncpa [#allocation8], 1 }
 0x25b   :  { %545 = vsyncpa [#allocation8 + $0x1], 1 }

</bundles_post_ra>
